<compile_context>
chip_gen: v5e
topology: v5e:2x2
jax: 0.10.0
libtpu: 0.0.40
codegen_flags: <defaults>
</compile_context>

<pallas_src>
import math

import jax
import jax.numpy as jnp
from jax.experimental import pallas as pl
from jax.experimental.pallas import tpu as pltpu


# ---------------------------------------------------------------------------
# Buffer setup: sinusoidal positional-encoding table, (max_len, 1, d_model),
# mirroring PositionalEncoding.__init__ exactly (deterministic, in-script).
# ---------------------------------------------------------------------------
def make_pe_table(d_model: int, max_len: int = 5000) -> jnp.ndarray:
    position = jnp.arange(0, max_len, dtype=jnp.float32)[:, None]            # (max_len, 1)
    div_term = jnp.exp(
        jnp.arange(0, d_model, 2, dtype=jnp.float32) * (-math.log(10000.0) / d_model)
    )                                                                         # (d_model/2,)
    angles = position * div_term                                              # (max_len, d_model/2)
    pe = jnp.zeros((max_len, d_model), dtype=jnp.float32)
    pe = pe.at[:, 0::2].set(jnp.sin(angles))
    pe = pe.at[:, 1::2].set(jnp.cos(angles))
    return pe[:, None, :]                                                     # (max_len, 1, d_model)


# ---------------------------------------------------------------------------
# Kernel: (tile_s, B, D) + (tile_s, 1, D) broadcast add (sublane broadcast of
# pe across the batch dim).  Pure VPU elementwise; HBM-bandwidth bound.
# ---------------------------------------------------------------------------
def add_pe_kernel(x_ref, pe_ref, o_ref):
    o_ref[...] = x_ref[...] + pe_ref[...]


def _choose_tile_rows(S: int, B: int, D: int, itemsize: int,
                      target_bytes: int = 4 << 20) -> int:
    """Seq rows per block, budgeting the *padded* VMEM cost of one row."""
    padded_row = (-(-B // 8) * 8) * (-(-D // 128) * 128) * itemsize
    rows = max(1, target_bytes // padded_row)
    # Guarantee >= ~4 grid steps when possible so the DMA pipeline actually
    # overlaps and both v7x TensorCores get sharded work.
    if S >= 4:
        rows = min(rows, max(1, S // 4))
    rows = min(rows, S)
    if rows >= 8:
        rows = (rows // 8) * 8
    return int(rows)


def positional_encoding_forward(x: jnp.ndarray, pe_table: jnp.ndarray) -> jnp.ndarray:
    """x: (seq_len, batch, d_model); pe_table: (max_len, 1, d_model)."""
    S, B, D = x.shape
    pe = pe_table[:S].astype(x.dtype)                       # (S, 1, D), cast once on host

    tile_s = _choose_tile_rows(S, B, D, x.dtype.itemsize)
    grid = (pl.cdiv(S, tile_s),)

    return pl.pallas_call(
        add_pe_kernel,
        out_shape=jax.ShapeDtypeStruct((S, B, D), x.dtype),
        grid=grid,
        in_specs=[
            pl.BlockSpec((tile_s, B, D), lambda i: (i, 0, 0)),
            pl.BlockSpec((tile_s, 1, D), lambda i: (i, 0, 0)),
        ],
        out_specs=pl.BlockSpec((tile_s, B, D), lambda i: (i, 0, 0)),
        input_output_aliases={0: 0},
        compiler_params=pltpu.CompilerParams(
            dimension_semantics=("parallel",),
            vmem_limit_bytes=48 << 20,
        ),
    )(x, pe)


if __name__ == "__main__":
    d_model = 32
    max_len = 64
    seq_len = 8
    batch = 2

    key = jax.random.PRNGKey(0)
    x = jax.random.normal(key, (seq_len, batch, d_model), dtype=jnp.float32)

    pe_table = make_pe_table(d_model, max_len)

    # Pure-JAX reference (same semantics as the PyTorch forward); computed
    # before the kernel call since the kernel may alias x's output buffer.
    ref = x + pe_table[:seq_len]

    out = positional_encoding_forward(x, pe_table)
    out = jax.block_until_ready(out)

    assert out.shape == x.shape
    assert jnp.allclose(out, ref, atol=1e-6, rtol=1e-6), "mismatch vs reference"

    print("KERNEL_OK")
</pallas_src>

<mosaic_0001>
module attributes {stable_mosaic.version = 11 : i64} {
  func.func @add_pe_kernel(%arg0: i32, %arg1: memref<2x2x32xf32, #tpu.memory_space<vmem>>, %arg2: memref<2x1x32xf32, #tpu.memory_space<vmem>>, %arg3: memref<2x2x32xf32, #tpu.memory_space<vmem>>) attributes {dimension_semantics = [#tpu.dimension_semantics<parallel>], iteration_bounds = array<i64: 4>, scalar_prefetch = 0 : i64, scratch_operands = 0 : i64, tpu.core_type = #tpu.core_type<tc>, window_params = [{transform_indices = @transform_0, window_bounds = array<i64: 2, 2, 32>}, {transform_indices = @transform_1, window_bounds = array<i64: 2, 1, 32>}, {transform_indices = @transform_2, window_bounds = array<i64: 2, 2, 32>}]} {
    %c0 = arith.constant 0 : index
    %c0_0 = arith.constant 0 : index
    %c0_1 = arith.constant 0 : index
    %0 = vector.load %arg1[%c0, %c0_0, %c0_1] : memref<2x2x32xf32, #tpu.memory_space<vmem>>, vector<2x2x32xf32>
    %c0_2 = arith.constant 0 : index
    %c0_3 = arith.constant 0 : index
    %c0_4 = arith.constant 0 : index
    %1 = vector.load %arg2[%c0_2, %c0_3, %c0_4] : memref<2x1x32xf32, #tpu.memory_space<vmem>>, vector<2x1x32xf32>
    %2 = vector.broadcast %1 : vector<2x1x32xf32> to vector<2x2x32xf32>
    %3 = arith.addf %0, %2 : vector<2x2x32xf32>
    %c0_5 = arith.constant 0 : index
    %c0_6 = arith.constant 0 : index
    %c0_7 = arith.constant 0 : index
    %4 = vector.load %arg3[%c0_5, %c0_6, %c0_7] : memref<2x2x32xf32, #tpu.memory_space<vmem>>, vector<2x2x32xf32>
    tpu.vector_store %arg3[%c0_5, %c0_6, %c0_7], %3 {strides = array<i32>} : memref<2x2x32xf32, #tpu.memory_space<vmem>>, vector<2x2x32xf32>,
    return
  }
  func.func @transform_0(%arg0: i32) -> (i32, i32, i32) {
    %c0_i32 = arith.constant 0 : i32
    %c0_i32_0 = arith.constant 0 : i32
    %c0_i32_1 = arith.constant 0 : i32
    return %arg0, %c0_i32, %c0_i32_0 : i32, i32, i32
  }
  func.func @transform_1(%arg0: i32) -> (i32, i32, i32) {
    %c0_i32 = arith.constant 0 : i32
    %c0_i32_0 = arith.constant 0 : i32
    %c0_i32_1 = arith.constant 0 : i32
    return %arg0, %c0_i32, %c0_i32_0 : i32, i32, i32
  }
  func.func @transform_2(%arg0: i32) -> (i32, i32, i32) {
    %c0_i32 = arith.constant 0 : i32
    %c0_i32_0 = arith.constant 0 : i32
    %c0_i32_1 = arith.constant 0 : i32
    return %arg0, %c0_i32, %c0_i32_0 : i32, i32, i32
  }
}

</mosaic_0001>

<bundles_post_ra>
// kernel: tpu_custom_call.1
= control target key start
LH: loop header
LB: loop body
LE: loop exit
PB: predicated region body
PF: predicated region fallthrough
CT: control target
= control target key end

     0   :  { %7 = vsyncpa [#allocation3], 0  ;;  %s613_s0 = inlined_call_operand.hbm [shape: f32[8,2,32], index: 0, kind: input, shape index: {}, may-alias: {0,2}]   ;;  %s614_s1 = inlined_call_operand.vmem [shape: f32[8,1,32], index: 1, kind: input, shape index: {}]   ;;  %s615_s2 = inlined_call_operand.hbm [shape: f32[8,2,32], index: 2, kind: output, shape index: {}, may-alias: {0,2}]  }
   0x1   :  { %9 = vsyncpa [#allocation3 + $0x1], 0 }
   0x2   :  { %10 = vsyncpa [#allocation4], 0 }
   0x3   :  { %12 = vsyncpa [#allocation4 + $0x1], 0  ;;  %s484_s9 = smov 0   ;;  %s486_s10 = smov 0  }
   0x4   :  { %s488_s11 = smov 0   ;;  %s490_s12 = smov 0  }
   0x5 LB: > { %s505_s13 = sadd.s32 4294967295, %s463_s12   ;;  %s298_s14 = sadd.s32 4294967294, %s463_s12   ;;  %s463_s12 = sphi %s490_s12, %s624_s12   ;;  %s459_s11 = sphi %s488_s11, %s623_s11   ;;  %s455_s10 = sphi %s486_s10, %s622_s10   ;;  %s451_s9 = sphi %s484_s9, %s621_s9  }
   0x6   : > { %s509_s15 = sadd.s32 1, %s463_s12   ;;  %s25_s16 = sadd.s32 1, %s459_s11 }
   0x7   : > { %s22_s17 = ssub.s32 %s463_s12, %s509_s15  ;;  %p32_p0 = scmp.ne.s32.totalorder %s459_s11, %s455_s10 }
   0x8   : > { %p23_p1 = scmp.eq.s32.totalorder %s22_s17, 0  ;;  %p33_p2 = scmp.eq.s32.totalorder %s463_s12, 0 }
   0x9   : > { %p38_p3 = scmp.ne.s32.totalorder %s455_s10, %s451_s9  ;;  %p39_p4 = scmp.eq.s32.totalorder %s505_s13, 0 }
   0xa   : > { %s521_s18 = scalar_select %p23_p1, %s459_s11, %s25_s16  }
   0xb   : > { %p523_p5 = por %p33_p2, %p32_p0  ;;  %p527_p6 = por %p39_p4, %p38_p3 }
   0xc   : > { %p88_p7 = scmp.eq.s32.totalorder %s505_s13, 3  ;;  %p94_p8 = scmp.eq.s32.totalorder %s298_s14, 3 }
   0xd   : > { %p327_p9 = scmp.lt.s32.totalorder %s463_s12, 4  ;;  %s114_s23 = sand.u32 1, %s459_s11  }
   0xe   : > { %p533_p10 = por %p88_p7, %p32_p0  ;;  %p537_p11 = por %p94_p8, %p38_p3 }
   0xf   : > { %s313_s24 = sshll.u32 %s463_s12, 2  ;;  %s301_s25 = sshll.u32 %s114_s23, 2 }
  0x10   : > { %s123_s28 = scalar_lea.hbm %s613_s0, %s313_s24  ;;  %s118_s30 = scalar_lea.vmem [#allocation2], %s301_s25 }
  0x11   : > { %s124_s29 = sshll.u32 %s123_s28, 4  ;;  %s126_s3 = sshll.u32 %s118_s30, 4  ;;  %s125_s29 = int_to_ptr.hbm [resolvable:$true] %s124_s29  ;;  %s127_s3 = int_to_ptr.vmem [resolvable:$true] %s126_s3 }
  0x12   : > { %p548_p12 = pnand %p327_p9, %p523_p5  ;;  %p304_p13 = scmp.ge.s32.totalorder %s463_s12, 1 }
  0x13   : > { %p142_p0 = scmp.lt.s32.totalorder %s463_s12, 5  ;;  %s115_s5 = scalar_lea.sflag [#allocation3], %s114_s23 }
  0x14   : > { %s367_s6 = sshra.s32 %s125_s29, 4  ;;  %p371_p2 = pneg %p548_p12  ;;  %s368_s6 = int_to_ptr.hbm [resolvable:$true] %s367_s6 }
  0x15   : > { %s369_s7 = scalar_lea.hbm %s368_s6, 4  ;;  %s374_s16 = scalar_lea.hbm %s613_s0, 16 }
  0x16   : > { %p370_p1 = scmp.ne.s32.totalorder %s368_s6, %s369_s7  ;;  %p375_p5 = scmp.lt.s32.totalorder %s368_s6, %s613_s0 }
  0x17   : > { %p376_p7 = scmp.lt.s32.totalorder %s374_s16, %s369_s7 }
  0x18   : > { %p372_p3 = pnand %p371_p2, %p370_p1 }
  0x19   : > { %p377_p8 = por %p376_p7, %p375_p5 }
  0x1a   : > { %p373_p4 = pneg %p372_p3 }
  0x1c   : > { %p378_p9 = pnand %p377_p8, %p373_p4 }
  0x1e   : > { %381 = shalt.err (!%p378_p9)
}
  0x1f   : > { %s465_s23 = smov 32   ;;  %s466_s24 = smov 2  }
  0x20   : > { %322 = dma.hbm_to_vmem [thread:$0]  (!%p548_p12), %s125_s29, 64, %s127_s3, %s115_s5, %s465_s23, %s465_s23, %s466_s24  }
  0x21   : > { %p143_p1 = pnand %p304_p13, %p142_p0 }
  0x22   : > { %s569_s25 = sand.u32 (!%p143_p1), 1, %s455_s10  }
  0x23   : > { %146 = sbr.rel (%p143_p1) target bundleno = 59 (0x3b), region = 28  ;;  %s305_s26 = sshll.u32 (!%p143_p1), %s569_s25, 2 }
  0x24   : > { %s149_s27 = scalar_lea.sflag (!%p143_p1), [#allocation3], %s569_s25  ;;  %s152_s28 = scalar_lea.vmem (!%p143_p1), [#allocation2], %s305_s26 }
  0x28   : > { %442 = dma.done.wait (%p527_p6), %s149_s27, 64  }
  0x29   : > { %444 = vsyncadd (%p527_p6), %s149_s27, 4294967232  ;;  %s307_s29 = sshll.u32 %s505_s13, 1  ;;  %s177_s30 = scalar_lea.vmem [#allocation5], %s305_s26  ;;  %vm197_vm0 = vcmask 254976   ;;  %v185_v0 = vld [vmem:[%s152_s28] sm:$0x3] }
  0x2a   : > { %p180_p12 = scmp.lt.s32.totalorder %s307_s29, 7  ;;  %s213_s3 = sshll.u32 %s177_s30, 4  ;;  %v186_v2 = vld [vmem:[%s152_s28 + $0x2] sm:$0x3]  ;;  %s214_s3 = int_to_ptr.vmem [resolvable:$true] %s213_s3 }
  0x2b   : > { %s314_s4 = sshll.u32 %s505_s13, 2  ;;  %s201_s13 = scalar_lea.sflag [#allocation4], %s569_s25 }
  0x2c   : > { %s626_s29 = smov (!%p180_p12, %s307_s29), 7  ;;  %s212_s16 = scalar_lea.hbm %s615_s2, %s314_s4 }
  0x2d   : > { %s182_s7 = scalar_lea.vmem %s614_s1, %s626_s29  ;;  %s215_s20 = sshll.u32 %s212_s16, 4  ;;  %s216_s20 = int_to_ptr.hbm [resolvable:$true] %s215_s20 }
  0x2e   : > { %v365_v1 = vld [vmem:[%s182_s7] ss:$0 sm:$0xff]  ;;  %v366_v3 = vld [vmem:[%s182_s7 + $0x1] ss:$0 sm:$0xff]  ;;  %s411_s17 = sshra.s32 %s216_s20, 4  ;;  %s417_s26 = scalar_lea.hbm %s615_s2, 16  ;;  %s412_s17 = int_to_ptr.hbm [resolvable:$true] %s411_s17 }
  0x2f   : > { %v195_v4 = vadd.f32 %v365_v1, %v185_v0  ;;  %v196_v5 = vadd.f32 %v366_v3, %v186_v2  ;;  %s413_s19 = scalar_lea.hbm %s412_s17, 4  ;;  %p418_p2 = scmp.lt.s32.totalorder %s412_s17, %s615_s2 }
  0x30   : > { %p414_p6 = scmp.ne.s32.totalorder %s412_s17, %s413_s19  ;;  %p419_p3 = scmp.lt.s32.totalorder %s417_s26, %s413_s19 }
  0x31   : > { %198 = vst.msk [vmem:[%s177_s30] sm:$0x3] %vm197_vm0, %v195_v4 }
  0x32   : > { %199 = vst.msk [vmem:[%s177_s30 + $0x2] sm:$0x3] %vm197_vm0, %v196_v5  ;;  %p415_p13 = pnand %p414_p6, %p533_p10  ;;  %p420_p4 = por %p419_p3, %p418_p2 }
  0x34   : > { %p416_p0 = pneg %p415_p13 }
  0x36   : > { %p421_p5 = pnand %p420_p4, %p416_p0 }
  0x38   : > { %424 = shalt.err (!%p421_p5)
}
  0x39   : > { %s467_s25 = smov 32   ;;  %s468_s29 = smov 2  }
  0x3a   : > { %317 = dma.vmem_to_hbm [thread:$0]  (%p533_p10), %s214_s3, 64, %s216_s20, %s201_s13, %s467_s25, %s467_s25, %s468_s29  }
  0x3b PF: > { %p328_p7 = scmp.ge.s32.totalorder %s463_s12, 2  ;;  %s230_s30 = sand.u32 1, %s451_s9  }
  0x3c   : > { %s231_s4 = scalar_lea.sflag [#allocation4], %s230_s30 }
  0x3d   : > { %p324_p8 = pnand %p328_p7, %p537_p11 }
  0x3f   : > { %p325_p9 = pneg %p324_p8 }
  0x41   : > { %446 = dma.done.wait (%p325_p9), %s231_s4, 64  }
  0x42   : > { %448 = vsyncadd (%p325_p9), %s231_s4, 4294967232  ;;  %p15_p1 = scmp.ge.s32.totalorder %s509_s15, 6   ;;  %s621_s9 = smov %s455_s10 }
  0x43   : > { %s622_s10 = smov %s459_s11  ;;  %s623_s11 = smov %s521_s18 }
  0x44   : > { %s624_s12 = smov %s509_s15  ;;  %17 = sbr.rel (!%p15_p1) target bundleno = 5 (0x5), region = 76 }
  0x49   :  { %237 = vsyncpa [#allocation3], 1 }
  0x4a   :  { %239 = vsyncpa [#allocation3 + $0x1], 1 }
  0x4b   :  { %240 = vsyncpa [#allocation4], 1 }
  0x4c   :  { %242 = vsyncpa [#allocation4 + $0x1], 1 }

</bundles_post_ra>
